<compile_context>
chip_gen: v7x
topology: tpu7x:2x2x1
jax: 0.10.0
libtpu: 0.0.40
codegen_flags: <defaults>
</compile_context>

<pallas_src>
import functools

import jax
import jax.numpy as jnp
from jax.experimental import pallas as pl
from jax.experimental.pallas import tpu as pltpu

_LANE = 128          # vreg lane width
_SUBLANE_BF16 = 16   # bf16 packs 16 rows per sublane group -> pad batch to 16

# Rows of the packed bias buffer (8, n_pad) f32.
_BIAS_B1 = 0   # feature_network[0] bias   (cols 0..hidden-1)
_BIAS_B2 = 1   # feature_network[2] bias   (cols 0..hidden-1)
_BIAS_M1 = 2   # move1_head bias           (cols 0..n_pad-1)
_BIAS_M2 = 3   # move2_head bias           (cols 0..n_pad-1)

_ARBITRARY = pltpu.CompilerParams(dimension_semantics=("arbitrary",))


def _round_up(n, m):
    return -(-n // m) * m


def _col_tiling(n_out):
    """(tile_width, num_tiles) for streaming the head weight column-wise."""
    if n_out % _LANE == 0 and n_out > _LANE:
        return _LANE, n_out // _LANE
    return n_out, 1


# ----------------------------------------------------------------------------
# Kernels
# ----------------------------------------------------------------------------
def _feature_net(x_ref, w1_ref, w2_ref, bias_ref, h2_ref):
    """feature_network: Linear->ReLU->Linear->ReLU, result stored bf16."""
    h1d = w1_ref.shape[1]
    h2d = w2_ref.shape[1]
    h1 = jnp.dot(x_ref[...], w1_ref[...], preferred_element_type=jnp.float32)
    h1 = jnp.maximum(h1 + bias_ref[_BIAS_B1:_BIAS_B1 + 1, :h1d], 0.0)
    h2 = jnp.dot(h1.astype(w2_ref.dtype), w2_ref[...],
                 preferred_element_type=jnp.float32)
    h2 = jnp.maximum(h2 + bias_ref[_BIAS_B2:_BIAS_B2 + 1, :h2d], 0.0)
    h2_ref[...] = h2.astype(h2_ref.dtype)


def _start_wo_gathers(sel_ref, wo_hbm_ref, wo_rows_ref, sem_ref, n_valid):
    """Row-gather Wo[sel[b]] for the real batch rows only (shared DMA sem)."""
    copies = [
        pltpu.make_async_copy(
            wo_hbm_ref.at[pl.ds(sel_ref[b], 1), :],
            wo_rows_ref.at[pl.ds(b, 1), :],
            sem_ref,
        )
        for b in range(n_valid)          # static loop over the true batch
    ]
    for c in copies:                     # all SMEM reads happen above, before
        c.start()                        # any wait (sst->sld forwarding)
    return copies


def _move1_kernel(x_ref, w1_ref, w2_ref, bias_ref, wm1_ref, q1_ref, h2_ref):
    """Fused feature_network + move1_head, head columns streamed over grid."""
    j = pl.program_id(0)
    tn = q1_ref.shape[1]

    @pl.when(j == 0)
    def _():
        _feature_net(x_ref, w1_ref, w2_ref, bias_ref, h2_ref)

    col0 = pl.multiple_of(j * tn, _LANE)
    q1_ref[...] = (jnp.dot(h2_ref[...], wm1_ref[...],
                           preferred_element_type=jnp.float32)
                   + bias_ref[_BIAS_M1:_BIAS_M1 + 1, pl.ds(col0, tn)])


def _move2_kernel(sel_ref, x_ref, w1_ref, w2_ref, bias_ref, wf_ref, wo_hbm_ref,
                  q2_ref, h2_ref, wo_rows_ref, sem_ref, *, n_valid):
    """Fused feature_network + move2_head.

    move2_head(concat(feat, onehot(sel))) == feat @ Wf + Wo[sel] + b.
    Wo[sel] rows are DMA'd from HBM (Wo never enters VMEM), overlapped with
    the feature-net MXU work; head columns streamed over the grid.
    """
    j = pl.program_id(0)
    tn = q2_ref.shape[1]

    @pl.when(j == 0)
    def _():
        copies = _start_wo_gathers(sel_ref, wo_hbm_ref, wo_rows_ref, sem_ref,
                                   n_valid)
        _feature_net(x_ref, w1_ref, w2_ref, bias_ref, h2_ref)
        for c in copies:
            c.wait()

    col0 = pl.multiple_of(j * tn, _LANE)
    q2_ref[...] = (jnp.dot(h2_ref[...], wf_ref[...],
                           preferred_element_type=jnp.float32)
                   + bias_ref[_BIAS_M2:_BIAS_M2 + 1, pl.ds(col0, tn)]
                   + wo_rows_ref[:, pl.ds(col0, tn)])


def _both_kernel(sel_ref, x_ref, w1_ref, w2_ref, bias_ref, wm1_ref, wf_ref,
                 wo_hbm_ref, q1_ref, q2_ref, h2_ref, wo_rows_ref, sem_ref,
                 *, n_valid):
    """Fused q1 + q2 for the same states: one feature-net pass, one launch."""
    j = pl.program_id(0)
    tn = q1_ref.shape[1]

    @pl.when(j == 0)
    def _():
        copies = _start_wo_gathers(sel_ref, wo_hbm_ref, wo_rows_ref, sem_ref,
                                   n_valid)
        _feature_net(x_ref, w1_ref, w2_ref, bias_ref, h2_ref)
        for c in copies:
            c.wait()

    col0 = pl.multiple_of(j * tn, _LANE)
    h2 = h2_ref[...]
    q1_ref[...] = (jnp.dot(h2, wm1_ref[...], preferred_element_type=jnp.float32)
                   + bias_ref[_BIAS_M1:_BIAS_M1 + 1, pl.ds(col0, tn)])
    q2_ref[...] = (jnp.dot(h2, wf_ref[...], preferred_element_type=jnp.float32)
                   + bias_ref[_BIAS_M2:_BIAS_M2 + 1, pl.ds(col0, tn)]
                   + wo_rows_ref[:, pl.ds(col0, tn)])


# ----------------------------------------------------------------------------
# pallas_call wrappers
# ----------------------------------------------------------------------------
@jax.jit
def _move1_call(x_p, w1, w2, bias, wm1):
    Bp, S = x_p.shape
    H = w1.shape[1]
    Np = wm1.shape[1]
    tn, nt = _col_tiling(Np)
    grid_spec = pltpu.PrefetchScalarGridSpec(
        num_scalar_prefetch=0,
        grid=(nt,),
        in_specs=[
            pl.BlockSpec((Bp, S), lambda j: (0, 0)),
            pl.BlockSpec((S, H), lambda j: (0, 0)),
            pl.BlockSpec((H, H), lambda j: (0, 0)),
            pl.BlockSpec(bias.shape, lambda j: (0, 0)),
            pl.BlockSpec((H, tn), lambda j: (0, j)),     # streamed head weight
        ],
        out_specs=pl.BlockSpec((Bp, tn), lambda j: (0, j)),
        scratch_shapes=[pltpu.VMEM((Bp, H), wm1.dtype)],  # h2 (bf16), carried
    )
    return pl.pallas_call(
        _move1_kernel,
        out_shape=jax.ShapeDtypeStruct((Bp, Np), jnp.float32),
        grid_spec=grid_spec,
        compiler_params=_ARBITRARY,
    )(x_p, w1, w2, bias, wm1)


@functools.partial(jax.jit, static_argnames=("n_valid",))
def _move2_call(sel_p, x_p, w1, w2, bias, wf, wo, *, n_valid):
    Bp, S = x_p.shape
    H = w1.shape[1]
    Np = wf.shape[1]
    tn, nt = _col_tiling(Np)
    grid_spec = pltpu.PrefetchScalarGridSpec(
        num_scalar_prefetch=1,                            # sel -> SMEM
        grid=(nt,),
        in_specs=[
            pl.BlockSpec((Bp, S), lambda j, sel: (0, 0)),
            pl.BlockSpec((S, H), lambda j, sel: (0, 0)),
            pl.BlockSpec((H, H), lambda j, sel: (0, 0)),
            pl.BlockSpec(bias.shape, lambda j, sel: (0, 0)),
            pl.BlockSpec((H, tn), lambda j, sel: (0, j)),  # streamed head weight
            pl.BlockSpec(memory_space=pl.ANY),             # Wo stays in HBM
        ],
        out_specs=pl.BlockSpec((Bp, tn), lambda j, sel: (0, j)),
        scratch_shapes=[
            pltpu.VMEM((Bp, H), wf.dtype),    # h2 (bf16), carried across j
            pltpu.VMEM((Bp, Np), wo.dtype),   # gathered Wo rows (bf16)
            pltpu.SemaphoreType.DMA,          # single shared gather semaphore
        ],
    )
    return pl.pallas_call(
        functools.partial(_move2_kernel, n_valid=n_valid),
        out_shape=jax.ShapeDtypeStruct((Bp, Np), jnp.float32),
        grid_spec=grid_spec,
        compiler_params=_ARBITRARY,
    )(sel_p, x_p, w1, w2, bias, wf, wo)


@functools.partial(jax.jit, static_argnames=("n_valid",))
def _both_call(sel_p, x_p, w1, w2, bias, wm1, wf, wo, *, n_valid):
    Bp, S = x_p.shape
    H = w1.shape[1]
    Np = wm1.shape[1]
    tn, nt = _col_tiling(Np)
    grid_spec = pltpu.PrefetchScalarGridSpec(
        num_scalar_prefetch=1,
        grid=(nt,),
        in_specs=[
            pl.BlockSpec((Bp, S), lambda j, sel: (0, 0)),
            pl.BlockSpec((S, H), lambda j, sel: (0, 0)),
            pl.BlockSpec((H, H), lambda j, sel: (0, 0)),
            pl.BlockSpec(bias.shape, lambda j, sel: (0, 0)),
            pl.BlockSpec((H, tn), lambda j, sel: (0, j)),
            pl.BlockSpec((H, tn), lambda j, sel: (0, j)),
            pl.BlockSpec(memory_space=pl.ANY),
        ],
        out_specs=[
            pl.BlockSpec((Bp, tn), lambda j, sel: (0, j)),
            pl.BlockSpec((Bp, tn), lambda j, sel: (0, j)),
        ],
        scratch_shapes=[
            pltpu.VMEM((Bp, H), wm1.dtype),
            pltpu.VMEM((Bp, Np), wo.dtype),
            pltpu.SemaphoreType.DMA,
        ],
    )
    return pl.pallas_call(
        functools.partial(_both_kernel, n_valid=n_valid),
        out_shape=(jax.ShapeDtypeStruct((Bp, Np), jnp.float32),
                   jax.ShapeDtypeStruct((Bp, Np), jnp.float32)),
        grid_spec=grid_spec,
        compiler_params=_ARBITRARY,
    )(sel_p, x_p, w1, w2, bias, wm1, wf, wo)


# ----------------------------------------------------------------------------
# Parameters / forward
# ----------------------------------------------------------------------------
def init_params(key, state_size, move_space_size=576, hidden=256,
                weight_dtype=jnp.bfloat16):
    """PyTorch-style init U(-1/sqrt(fan_in), 1/sqrt(fan_in)).

    Matmul weights stored in bf16 (native MXU dtype); head output dims padded
    to a multiple of 128 lanes with zeros; all biases packed into one (8, Np)
    f32 buffer shared by every kernel.
    """
    n_pad = _round_up(move_space_size, _LANE)

    def uniform(k, shape, fan_in):
        bound = 1.0 / (fan_in ** 0.5)
        return jax.random.uniform(k, shape, jnp.float32, -bound, bound)

    k1, k2, k3, k4, k5, k6, k7, k8 = jax.random.split(key, 8)
    w1 = uniform(k1, (state_size, hidden), state_size)       # feature_network[0]
    b1 = uniform(k2, (hidden,), state_size)
    w2 = uniform(k3, (hidden, hidden), hidden)                # feature_network[2]
    b2 = uniform(k4, (hidden,), hidden)
    wm1 = uniform(k5, (hidden, move_space_size), hidden)      # move1_head
    bm1 = uniform(k6, (move_space_size,), hidden)
    fan2 = hidden + move_space_size
    wm2 = uniform(k7, (fan2, move_space_size), fan2)          # move2_head
    bm2 = uniform(k8, (move_space_size,), fan2)

    pad = n_pad - move_space_size
    wm1_p = jnp.pad(wm1, ((0, 0), (0, pad)))
    wm2_p = jnp.pad(wm2, ((0, 0), (0, pad)))

    bias = jnp.zeros((8, n_pad), jnp.float32)
    bias = bias.at[_BIAS_B1, :hidden].set(b1)
    bias = bias.at[_BIAS_B2, :hidden].set(b2)
    bias = bias.at[_BIAS_M1, :move_space_size].set(bm1)
    bias = bias.at[_BIAS_M2, :move_space_size].set(bm2)

    wd = weight_dtype
    return dict(
        w1=w1.astype(wd), w2=w2.astype(wd),
        wm1=wm1_p.astype(wd),
        wm2_feat=wm2_p[:hidden].astype(wd),
        wm2_onehot=wm2_p[hidden:].astype(wd),   # (576, 640) bf16, row-gathered
        bias=bias,
        move_space_size=move_space_size,
        hidden=hidden,
    )


def _pad_inputs(params, x, selected_move1):
    m = params["move_space_size"]
    B = x.shape[0]
    Bp = _round_up(max(B, 1), _SUBLANE_BF16)
    # NOTE: x is quantized to bf16 before the first matmul (weights are bf16).
    x_p = jnp.pad(x.astype(params["w1"].dtype), ((0, Bp - B), (0, 0)))
    sel_p = None
    if selected_move1 is not None:
        # Out-of-range move1 indices are clamped (keeps the HBM row DMA safe).
        sel = jnp.clip(selected_move1.astype(jnp.int32), 0, m - 1)
        sel_p = jnp.pad(sel, (0, Bp - B))
    return x_p, sel_p, B, m


def decomposed_dqn_forward(params, x, selected_move1=None):
    """Mirrors DecomposedDQN.forward semantics."""
    x_p, sel_p, B, m = _pad_inputs(params, x, selected_move1)
    if selected_move1 is None:
        q1 = _move1_call(x_p, params["w1"], params["w2"], params["bias"],
                         params["wm1"])
        return q1[:B, :m]
    q2 = _move2_call(sel_p, x_p, params["w1"], params["w2"], params["bias"],
                     params["wm2_feat"], params["wm2_onehot"], n_valid=B)
    return q2[:B, :m]


def decomposed_dqn_forward_both(params, x, selected_move1):
    """Fused variant: q1 AND q2 for the same states (one launch, one
    feature-net pass) for callers doing two-step action selection."""
    x_p, sel_p, B, m = _pad_inputs(params, x, selected_move1)
    q1, q2 = _both_call(sel_p, x_p, params["w1"], params["w2"], params["bias"],
                        params["wm1"], params["wm2_feat"],
                        params["wm2_onehot"], n_valid=B)
    return q1[:B, :m], q2[:B, :m]


# ----------------------------------------------------------------------------
# Plain-JAX reference (same bf16-quantized weights, exact f32 accumulation)
# ----------------------------------------------------------------------------
def _reference(params, x, selected_move1=None):
    m = params["move_space_size"]
    H = params["hidden"]
    f32 = jnp.float32
    hi = jax.lax.Precision.HIGHEST
    b1 = params["bias"][_BIAS_B1, :H]
    b2 = params["bias"][_BIAS_B2, :H]
    bm1 = params["bias"][_BIAS_M1]
    bm2 = params["bias"][_BIAS_M2]

    xq = x.astype(params["w1"].dtype).astype(f32)
    h = jnp.maximum(jnp.dot(xq, params["w1"].astype(f32), precision=hi) + b1, 0.0)
    hq = h.astype(params["w2"].dtype).astype(f32)
    h = jnp.maximum(jnp.dot(hq, params["w2"].astype(f32), precision=hi) + b2, 0.0)
    hq = h.astype(params["wm1"].dtype).astype(f32)
    if selected_move1 is None:
        q1 = jnp.dot(hq, params["wm1"].astype(f32), precision=hi) + bm1
        return q1[:, :m]
    q2 = jnp.dot(hq, params["wm2_feat"].astype(f32), precision=hi) + bm2
    sel = jnp.clip(selected_move1.astype(jnp.int32), 0, m - 1)
    q2 = q2 + params["wm2_onehot"][sel].astype(f32)
    return q2[:, :m]


if __name__ == "__main__":
    batch = 2
    state_size = 32
    move_space_size = 576

    key = jax.random.PRNGKey(0)
    kp, kx, ks = jax.random.split(key, 3)

    params = init_params(kp, state_size, move_space_size)
    x = jax.random.normal(kx, (batch, state_size), jnp.float32)
    selected_move1 = jax.random.randint(ks, (batch,), 0, move_space_size,
                                        jnp.int32)

    # Branch 1: selected_move1 is None -> move1 Q-values
    q1 = jax.block_until_ready(decomposed_dqn_forward(params, x, None))
    # Branch 2: selected_move1 provided -> move2 Q-values
    q2 = jax.block_until_ready(decomposed_dqn_forward(params, x, selected_move1))
    # Fused variant: both heads from one launch
    q1b, q2b = jax.block_until_ready(
        decomposed_dqn_forward_both(params, x, selected_move1))

    assert q1.shape == (batch, move_space_size)
    assert q2.shape == (batch, move_space_size)
    assert q1b.shape == (batch, move_space_size)
    assert q2b.shape == (batch, move_space_size)

    q1_ref = _reference(params, x, None)
    q2_ref = _reference(params, x, selected_move1)
    for got, ref in ((q1, q1_ref), (q2, q2_ref), (q1b, q1_ref), (q2b, q2_ref)):
        assert jnp.allclose(got, ref, atol=1e-4, rtol=1e-3), \
            float(jnp.max(jnp.abs(got - ref)))

    print("KERNEL_OK")
</pallas_src>

<mosaic_0001>
module attributes {stable_mosaic.version = 11 : i64} {
  func.func @_move1_kernel(%arg0: i32, %arg1: memref<16x32xbf16, #tpu.memory_space<vmem>>, %arg2: memref<32x256xbf16, #tpu.memory_space<vmem>>, %arg3: memref<256x256xbf16, #tpu.memory_space<vmem>>, %arg4: memref<8x640xf32, #tpu.memory_space<vmem>>, %arg5: memref<256x128xbf16, #tpu.memory_space<vmem>>, %arg6: memref<16x128xf32, #tpu.memory_space<vmem>>, %arg7: memref<16x256xbf16, #tpu.memory_space<vmem>>) attributes {dimension_semantics = [#tpu.dimension_semantics<arbitrary>], iteration_bounds = array<i64: 5>, scalar_prefetch = 0 : i64, scratch_operands = 1 : i64, tpu.core_type = #tpu.core_type<tc>, window_params = [{pipeline_mode = #tpu.pipeline_mode<synchronous>, transform_indices = @transform_0, window_bounds = array<i64: 16, 32>}, {pipeline_mode = #tpu.pipeline_mode<synchronous>, transform_indices = @transform_1, window_bounds = array<i64: 32, 256>}, {pipeline_mode = #tpu.pipeline_mode<synchronous>, transform_indices = @transform_2, window_bounds = array<i64: 256, 256>}, {pipeline_mode = #tpu.pipeline_mode<synchronous>, transform_indices = @transform_3, window_bounds = array<i64: 8, 640>}, {transform_indices = @transform_4, window_bounds = array<i64: 256, 128>}, {transform_indices = @transform_5, window_bounds = array<i64: 16, 128>}]} {
    %c0_i32 = arith.constant 0 : i32
    %0 = arith.cmpi eq, %arg0, %c0_i32 : i32
    %1 = arith.extui %0 : i1 to i32
    %c0_i32_0 = arith.constant 0 : i32
    %2 = arith.cmpi ne, %1, %c0_i32_0 : i32
    scf.if %2 {
      %c0_6 = arith.constant 0 : index
      %c0_7 = arith.constant 0 : index
      %13 = vector.load %arg1[%c0_6, %c0_7] : memref<16x32xbf16, #tpu.memory_space<vmem>>, vector<16x32xbf16>
      %c0_8 = arith.constant 0 : index
      %c0_9 = arith.constant 0 : index
      %14 = vector.load %arg2[%c0_8, %c0_9] : memref<32x256xbf16, #tpu.memory_space<vmem>>, vector<32x256xbf16>
      %cst_10 = arith.constant dense<0.000000e+00> : vector<16x256xf32>
      %15 = tpu.matmul %13, %14, %cst_10 {dimension_numbers = #tpu.dot_dimension_numbers<[1], [0], [0], [1], [0, 0, 1, 1], [], []>} : vector<16x32xbf16>, vector<32x256xbf16>, vector<16x256xf32> -> vector<16x256xf32>
      %c0_11 = arith.constant 0 : index
      %c0_12 = arith.constant 0 : index
      %16 = vector.load %arg4[%c0_11, %c0_12] : memref<8x640xf32, #tpu.memory_space<vmem>>, vector<1x256xf32>
      %17 = vector.broadcast %16 : vector<1x256xf32> to vector<16x256xf32>
      %18 = arith.addf %15, %17 : vector<16x256xf32>
      %cst_13 = arith.constant 0.000000e+00 : f32
      %19 = vector.broadcast %cst_13 : f32 to vector<16x256xf32>
      %20 = arith.maximumf %18, %19 : vector<16x256xf32>
      %21 = arith.truncf %20 : vector<16x256xf32> to vector<16x256xbf16>
      %c0_14 = arith.constant 0 : index
      %c0_15 = arith.constant 0 : index
      %22 = vector.load %arg3[%c0_14, %c0_15] : memref<256x256xbf16, #tpu.memory_space<vmem>>, vector<256x256xbf16>
      %cst_16 = arith.constant dense<0.000000e+00> : vector<16x256xf32>
      %23 = tpu.matmul %21, %22, %cst_16 {dimension_numbers = #tpu.dot_dimension_numbers<[1], [0], [0], [1], [0, 0, 1, 1], [], []>} : vector<16x256xbf16>, vector<256x256xbf16>, vector<16x256xf32> -> vector<16x256xf32>
      %c1 = arith.constant 1 : index
      %c0_17 = arith.constant 0 : index
      %24 = vector.load %arg4[%c1, %c0_17] : memref<8x640xf32, #tpu.memory_space<vmem>>, vector<1x256xf32>
      %25 = vector.broadcast %24 : vector<1x256xf32> to vector<16x256xf32>
      %26 = arith.addf %23, %25 : vector<16x256xf32>
      %cst_18 = arith.constant 0.000000e+00 : f32
      %27 = vector.broadcast %cst_18 : f32 to vector<16x256xf32>
      %28 = arith.maximumf %26, %27 : vector<16x256xf32>
      %29 = arith.truncf %28 : vector<16x256xf32> to vector<16x256xbf16>
      %c0_19 = arith.constant 0 : index
      %c0_20 = arith.constant 0 : index
      %30 = vector.load %arg7[%c0_19, %c0_20] : memref<16x256xbf16, #tpu.memory_space<vmem>>, vector<16x256xbf16>
      tpu.vector_store %arg7[%c0_19, %c0_20], %29 {strides = array<i32>} : memref<16x256xbf16, #tpu.memory_space<vmem>>, vector<16x256xbf16>,
    } else {
    }
    %c128_i32 = arith.constant 128 : i32
    %3 = arith.muli %arg0, %c128_i32 : i32
    %4 = tpu.assume_multiple %3, 128 : i32
    %c0 = arith.constant 0 : index
    %c0_1 = arith.constant 0 : index
    %5 = vector.load %arg7[%c0, %c0_1] : memref<16x256xbf16, #tpu.memory_space<vmem>>, vector<16x256xbf16>
    %c0_2 = arith.constant 0 : index
    %c0_3 = arith.constant 0 : index
    %6 = vector.load %arg5[%c0_2, %c0_3] : memref<256x128xbf16, #tpu.memory_space<vmem>>, vector<256x128xbf16>
    %cst = arith.constant dense<0.000000e+00> : vector<16x128xf32>
    %7 = tpu.matmul %5, %6, %cst {dimension_numbers = #tpu.dot_dimension_numbers<[1], [0], [0], [1], [0, 0, 1, 1], [], []>} : vector<16x256xbf16>, vector<256x128xbf16>, vector<16x128xf32> -> vector<16x128xf32>
    %c2 = arith.constant 2 : index
    %8 = arith.index_cast %4 : i32 to index
    %9 = vector.load %arg4[%c2, %8] : memref<8x640xf32, #tpu.memory_space<vmem>>, vector<1x128xf32>
    %10 = vector.broadcast %9 : vector<1x128xf32> to vector<16x128xf32>
    %11 = arith.addf %7, %10 : vector<16x128xf32>
    %c0_4 = arith.constant 0 : index
    %c0_5 = arith.constant 0 : index
    %12 = vector.load %arg6[%c0_4, %c0_5] : memref<16x128xf32, #tpu.memory_space<vmem>>, vector<16x128xf32>
    tpu.vector_store %arg6[%c0_4, %c0_5], %11 {strides = array<i32>} : memref<16x128xf32, #tpu.memory_space<vmem>>, vector<16x128xf32>,
    return
  }
  func.func @transform_0(%arg0: i32) -> (i32, i32) {
    %c0_i32 = arith.constant 0 : i32
    %c0_i32_0 = arith.constant 0 : i32
    %c0_i32_1 = arith.constant 0 : i32
    return %c0_i32, %c0_i32_0 : i32, i32
  }
  func.func @transform_1(%arg0: i32) -> (i32, i32) {
    %c0_i32 = arith.constant 0 : i32
    %c0_i32_0 = arith.constant 0 : i32
    %c0_i32_1 = arith.constant 0 : i32
    return %c0_i32, %c0_i32_0 : i32, i32
  }
  func.func @transform_2(%arg0: i32) -> (i32, i32) {
    %c0_i32 = arith.constant 0 : i32
    %c0_i32_0 = arith.constant 0 : i32
    %c0_i32_1 = arith.constant 0 : i32
    return %c0_i32, %c0_i32_0 : i32, i32
  }
  func.func @transform_3(%arg0: i32) -> (i32, i32) {
    %c0_i32 = arith.constant 0 : i32
    %c0_i32_0 = arith.constant 0 : i32
    %c0_i32_1 = arith.constant 0 : i32
    return %c0_i32, %c0_i32_0 : i32, i32
  }
  func.func @transform_4(%arg0: i32) -> (i32, i32) {
    %c0_i32 = arith.constant 0 : i32
    %c0_i32_0 = arith.constant 0 : i32
    return %c0_i32, %arg0 : i32, i32
  }
  func.func @transform_5(%arg0: i32) -> (i32, i32) {
    %c0_i32 = arith.constant 0 : i32
    %c0_i32_0 = arith.constant 0 : i32
    return %c0_i32, %arg0 : i32, i32
  }
}

</mosaic_0001>

<bundles_post_ra>
// kernel: _move1_call.1
= control target key start
LH: loop header
LB: loop body
LE: loop exit
PB: predicated region body
PF: predicated region fallthrough
CT: control target
= control target key end

     0   :  { %s1792_s0 = inlined_call_operand.hbm [shape: bf16[16,32], index: 0, kind: input, shape index: {}]   ;;  %s1793_s1 = inlined_call_operand.hbm [shape: bf16[32,256], index: 1, kind: input, shape index: {}]   ;;  %s1794_s2 = inlined_call_operand.hbm [shape: bf16[256,256], index: 2, kind: input, shape index: {}]   ;;  %s1795_s3 = inlined_call_operand.hbm [shape: f32[8,640], index: 3, kind: input, shape index: {}]   ;;  %s1796_s4 = inlined_call_operand.hbm [shape: bf16[256,640], index: 4, kind: input, shape index: {}]   ;;  %s1797_s5 = inlined_call_operand.hbm [shape: f32[16,640], index: 5, kind: output, shape index: {}]  }
   0x1   :  { %1809 = sst [smem:[#allocation22_spill]] %s1792_s0 }
   0x2   :  { %10 = vsyncpa [#allocation4], 0 }
   0x3   :  { %11 = vsyncpa [#allocation7], 0 }
   0x4   :  { %12 = vsyncpa [#allocation10], 0 }
   0x5   :  { %13 = vsyncpa [#allocation5], 0 }
   0x6   :  { %15 = vsyncpa [#allocation5 + $0x1], 0  ;;  %s1491_s18 = smov 0   ;;  %s1493_s19 = smov 0  }
   0x7   :  { %s1495_s20 = smov 0   ;;  %s1497_s21 = smov 0  }
   0x8 LB: > { %1810 = sst [smem:[#allocation18_spill]] %s1432_s18  ;;  %s1512_s22 = sadd.s32 4294967295, %s1444_s21   ;;  %s1444_s21 = sphi %s1497_s21, %s1841_s21   ;;  %s1440_s20 = sphi %s1495_s20, %s1845_s20   ;;  %s1436_s19 = sphi %s1493_s19, %s1844_s19   ;;  %s1432_s18 = sphi %s1491_s18, %s1843_s18  }
   0x9   : > { %s958_s23 = sadd.s32 4294967294, %s1444_s21   ;;  %s1516_s24 = sadd.s32 1, %s1444_s21  }
   0xa   : > { %1811 = sst [smem:[#allocation19_spill]] %s1516_s24  ;;  %s112_s25 = sadd.s32 1, %s1440_s20 }
   0xb   : > { %s109_s26 = ssub.s32 %s1444_s21, %s1516_s24  ;;  %p119_p0 = scmp.ne.s32.totalorder %s1440_s20, %s1436_s19 }
   0xc   : > { %p110_p1 = scmp.eq.s32.totalorder %s109_s26, 0  ;;  %p120_p2 = scmp.eq.s32.totalorder %s1444_s21, 0 }
   0xd   : > { %p125_p3 = scmp.ne.s32.totalorder %s1436_s19, %s1432_s18  ;;  %p1798_p4 = scmp.eq.s32.totalorder %s1512_s22, 0 }
   0xe   : > { %s1528_s27 = scalar_select %p110_p1, %s1440_s20, %s112_s25  }
   0xf   : > { %p1530_p5 = por %p120_p2, %p119_p0  ;;  %p1536_p6 = por %p1798_p4, %p125_p3 }
  0x10   : > { %1812 = sst [smem:[#allocation20_spill]] %s1528_s27  ;;  %p149_p7 = scmp.eq.s32.totalorder %s1512_s22, 4 }
  0x11   : > { %s1813_s28 = scalar_select %p1530_p5, 1, 0 }
  0x12   : > { %s1814_s29 = scalar_select %p1536_p6, 1, 0 }
  0x13   : > { %p155_p8 = scmp.eq.s32.totalorder %s958_s23, 4  ;;  %p959_p9 = scmp.ge.s32.totalorder %s1444_s21, 1 }
  0x14   : > { %p162_p10 = scmp.lt.s32.totalorder %s1444_s21, 6  ;;  %p1543_p11 = por %p149_p7, %p119_p0 }
  0x15   : > { %p1547_p12 = por %p155_p8, %p125_p3  ;;  %s1446_s8 = smov [#allocation3]  }
  0x16   : > { %s1815_s30 = scalar_select %p1543_p11, 1, 0 }
  0x17   : > { %s1816_s6 = scalar_select %p1547_p12, 1, 0 }
  0x18   : > { %p1551_p13 = pnand %p959_p9, %p162_p10  ;;  %s174_s9 = sshll.u32 %s1446_s8, 4  ;;  %s175_s9 = int_to_ptr.vmem [resolvable:$true] %s174_s9 }
  0x19   : > { %1817 = sst [smem:[#allocation21_spill]] %s1816_s6  ;;  %s1447_s11 = smov [#allocation6]  }
  0x1a   : > { %s1818_s7 = scalar_select %p1551_p13, 1, 0 }
  0x1b   : > { %p1077_p2 = pneg %p1551_p13  ;;  %s187_s12 = sshll.u32 %s1447_s11, 4  ;;  %s188_s12 = int_to_ptr.vmem [resolvable:$true] %s187_s12 }
  0x1c   : > { %s1820_s0 = sld [smem:[#allocation22_spill]] }
  0x1d   : > { %p1560_p0 = pnand %p1077_p2, %p1798_p4 }
  0x1f   : > { %p1573_p8 = pneg %p1560_p0 }
  0x22   : > { %s1224_s15 = scalar_lea.hbm %s1820_s0, 128 }
  0x23   : > { %p1225_p7 = scmp.ne.s32.totalorder %s1820_s0, %s1224_s15  ;;  %p1231_p2 = scmp.lt.u32.totalorder %s1224_s15, %s1820_s0 }
  0x25   : > { %p1227_p9 = pnand %p1573_p8, %p1225_p7 }
  0x27   : > { %p1228_p10 = pneg %p1227_p9 }
  0x29   : > { %p1233_p1 = pnand %p1231_p2, %p1228_p10 }
  0x2b   : > { %1236 = shalt.err (!%p1233_p1)
}
  0x2c   : > { %s1237_s8 = scalar_lea.vmem %s175_s9, 128  ;;  %p1245_p11 = scmp.lt.s32.totalorder %s175_s9, %s175_s9 }
  0x2d   : > { %p1238_p4 = scmp.ne.s32.totalorder %s175_s9, %s1237_s8  ;;  %p1246_p6 = scmp.lt.s32.totalorder %s1237_s8, %s1237_s8 }
  0x2f   : > { %p1240_p3 = pnand %p1238_p4, %p1573_p8  ;;  %p1247_p13 = por %p1246_p6, %p1245_p11 }
  0x31   : > { %p1241_p12 = pneg %p1240_p3 }
  0x33   : > { %p1248_p5 = pnand %p1247_p13, %p1241_p12 }
  0x35   : > { %1251 = shalt.err (!%p1248_p5)
}
  0x36   : > { %s1803_s11 = smov 64   ;;  %s1804_s13 = smov 4  }
  0x37   : > { %1080 = dma.hbm_to_vmem [thread:$0]  (!%p1560_p0), %s1820_s0, 128, %s175_s9, [#allocation4], %s1803_s11, %s1803_s11, %s1804_s13  }
  0x38   : > { %p1822_p4 = scmp.ne.s32.totalorder %s1813_s28, 0  ;;  %p1823_p1 = scmp.lt.s32.totalorder %s1444_s21, 5 }
  0x39   : > { %s1252_s26 = scalar_lea.hbm %s1793_s1, 512 }
  0x3a   : > { %p1596_p3 = pnand %p1823_p1, %p1822_p4  ;;  %p1253_p5 = scmp.ne.s32.totalorder %s1793_s1, %s1252_s26 }
  0x3b   : > { %p1259_p12 = scmp.lt.u32.totalorder %s1252_s26, %s1793_s1 }
  0x3c   : > { %s1824_s16 = scalar_select %p1596_p3, 1, 0 }
  0x3d   : > { %p1255_p6 = pnand %p1253_p5, %p1573_p8 }
  0x3f   : > { %p1256_p11 = pneg %p1255_p6 }
  0x41   : > { %p1261_p13 = pnand %p1259_p12, %p1256_p11 }
  0x43   : > { %1264 = shalt.err (!%p1261_p13)
}
  0x44   : > { %s1265_s28 = scalar_lea.vmem %s188_s12, 512  ;;  %p1273_p2 = scmp.lt.s32.totalorder %s188_s12, %s188_s12 }
  0x45   : > { %p1266_p7 = scmp.ne.s32.totalorder %s188_s12, %s1265_s28  ;;  %p1274_p4 = scmp.lt.s32.totalorder %s1265_s28, %s1265_s28 }
  0x47   : > { %p1268_p9 = pnand %p1266_p7, %p1573_p8  ;;  %p1275_p1 = por %p1274_p4, %p1273_p2 }
  0x49   : > { %p1269_p10 = pneg %p1268_p9 }
  0x4b   : > { %p1276_p3 = pnand %p1275_p1, %p1269_p10 }
  0x4d   : > { %1279 = shalt.err (!%p1276_p3)
}
  0x4e   : > { %s1450_s27 = smov 128   ;;  %s1451_s15 = smov 8  }
  0x4f   : > { %1083 = dma.hbm_to_vmem [thread:$0]  (!%p1560_p0), %s1793_s1, 512, %s188_s12, [#allocation7], %s1450_s27, %s1450_s27, %s1451_s15  }
  0x50   : > { %s1452_s26 = smov [#allocation8]   ;;  %s1453_s14 = smov [#allocation9]  }
  0x51   : > { %s200_s8 = sshll.u32 %s1452_s26, 4  ;;  %s214_s9 = sshll.u32 %s1453_s14, 4  ;;  %s201_s8 = int_to_ptr.vmem [resolvable:$true] %s200_s8  ;;  %s215_s9 = int_to_ptr.vmem [resolvable:$true] %s214_s9 }
  0x52   : > { %s1280_s28 = scalar_lea.hbm %s1794_s2, 4096 }
  0x53   : > { %p1281_p3 = scmp.ne.s32.totalorder %s1794_s2, %s1280_s28  ;;  %p1287_p11 = scmp.lt.u32.totalorder %s1280_s28, %s1794_s2 }
  0x55   : > { %p1283_p5 = pnand %p1281_p3, %p1573_p8 }
  0x57   : > { %p1284_p6 = pneg %p1283_p5 }
  0x59   : > { %p1289_p12 = pnand %p1287_p11, %p1284_p6 }
  0x5b   : > { %1292 = shalt.err (!%p1289_p12)
}
  0x5c   : > { %s1293_s12 = scalar_lea.vmem %s201_s8, 4096  ;;  %p1301_p10 = scmp.lt.s32.totalorder %s201_s8, %s201_s8 }
  0x5d   : > { %p1294_p13 = scmp.ne.s32.totalorder %s201_s8, %s1293_s12  ;;  %p1302_p2 = scmp.lt.s32.totalorder %s1293_s12, %s1293_s12 }
  0x5f   : > { %p1296_p7 = pnand %p1294_p13, %p1573_p8  ;;  %p1303_p4 = por %p1302_p2, %p1301_p10 }
  0x61   : > { %p1297_p9 = pneg %p1296_p7 }
  0x63   : > { %p1304_p1 = pnand %p1303_p4, %p1297_p9 }
  0x65   : > { %1307 = shalt.err (!%p1304_p1)
}
  0x66   : > { %1086 = dma.hbm_to_vmem [thread:$0]  (!%p1560_p0), %s1794_s2, 4096, %s201_s8, [#allocation7], %s1450_s27, %s1450_s27, %s1451_s15  }
  0x67   : > { %s225_s18 = sand.u32 1, %s1444_s21   ;;  %s1308_s13 = scalar_lea.hbm %s1795_s3, 640 }
  0x68   : > { %p1309_p3 = scmp.ne.s32.totalorder %s1795_s3, %s1308_s13  ;;  %p1315_p11 = scmp.lt.u32.totalorder %s1308_s13, %s1795_s3 }
  0x6a   : > { %p1311_p5 = pnand %p1309_p3, %p1573_p8 }
  0x6c   : > { %p1312_p6 = pneg %p1311_p5 }
  0x6e   : > { %p1317_p12 = pnand %p1315_p11, %p1312_p6 }
  0x70   : > { %1320 = shalt.err (!%p1317_p12)
}
  0x71   : > { %s1321_s27 = scalar_lea.vmem %s215_s9, 640  ;;  %p1329_p10 = scmp.lt.s32.totalorder %s215_s9, %s215_s9 }
  0x72   : > { %p1322_p13 = scmp.ne.s32.totalorder %s215_s9, %s1321_s27  ;;  %p1330_p2 = scmp.lt.s32.totalorder %s1321_s27, %s1321_s27 }
  0x74   : > { %p1324_p7 = pnand %p1322_p13, %p1573_p8  ;;  %p1331_p4 = por %p1330_p2, %p1329_p10 }
  0x76   : > { %p1325_p9 = pneg %p1324_p7 }
  0x78   : > { %p1332_p1 = pnand %p1331_p4, %p1325_p9 }
  0x7a   : > { %1335 = shalt.err (!%p1332_p1)
}
  0x7b   : > { %1089 = dma.hbm_to_vmem [thread:$0]  (!%p1560_p0), %s1795_s3, 640, %s215_s9, [#allocation10]  }
  0x7c   : > { %s227_s28 = sand.u32 1, %s1440_s20   ;;  %s966_s23 = sshll.u32 %s1444_s21, 6 }
  0x7d   : > { %s965_s12 = sshll.u32 %s227_s28, 7  ;;  %s1660_s6 = scalar_lea.hbm %s1796_s4, %s966_s23 }
  0x7e   : > { %s229_s10 = scalar_lea.vmem [#allocation11], %s965_s12  ;;  %s1664_s13 = scalar_lea.sflag [#allocation4], %s225_s18 }
  0x7f   : > { %s235_s11 = sshll.u32 %s229_s10, 4  ;;  %s1336_s17 = scalar_lea.hbm %s1660_s6, 2048  ;;  %s1662_s11 = int_to_ptr.vmem [resolvable:$true] %s235_s11 }
  0x80   : > { %p1337_p0 = scmp.ne.s32.totalorder %s1660_s6, %s1336_s17  ;;  %p1825_p8 = scmp.ne.s32.totalorder %s1824_s16, 0 }
  0x81   : > { %s1341_s26 = scalar_lea.hbm %s1796_s4, 10240  ;;  %p1342_p11 = scmp.lt.u32.totalorder %s1660_s6, %s1796_s4 }
  0x82   : > { %p1338_p3 = pneg %p1825_p8  ;;  %p1343_p12 = scmp.lt.u32.totalorder %s1341_s26, %s1336_s17 }
  0x83   : > { %p1345_p7 = scmp.lt.u32.totalorder %s1336_s17, %s1660_s6 }
  0x84   : > { %p1339_p5 = pnand %p1338_p3, %p1337_p0  ;;  %p1344_p13 = por %p1343_p12, %p1342_p11 }
  0x86   : > { %p1340_p6 = pneg %p1339_p5  ;;  %p1346_p9 = por %p1345_p7, %p1344_p13 }
  0x88   : > { %p1347_p10 = pnand %p1346_p9, %p1340_p6 }
  0x8a   : > { %1350 = shalt.err (!%p1347_p10)
}
  0x8b   : > { %s1351_s18 = scalar_lea.vmem %s1662_s11, 2048  ;;  %s1454_s15 = smov [#allocation11]  }
  0x8c   : > { %p1352_p2 = scmp.ne.s32.totalorder %s1662_s11, %s1351_s18  ;;  %s1356_s8 = sshll.u32 %s1454_s15, 4  ;;  %s1357_s8 = int_to_ptr.vmem [resolvable:$false] %s1356_s8 }
  0x8d   : > { %s1358_s28 = scalar_lea.vmem %s1357_s8, 4096  ;;  %p1359_p0 = scmp.lt.s32.totalorder %s1662_s11, %s1357_s8 }
  0x8e   : > { %p1354_p4 = pnand %p1352_p2, %p1338_p3  ;;  %p1360_p5 = scmp.lt.s32.totalorder %s1358_s28, %s1351_s18 }
  0x90   : > { %p1355_p1 = pneg %p1354_p4  ;;  %p1361_p11 = por %p1360_p5, %p1359_p0 }
  0x92   : > { %p1362_p12 = pnand %p1361_p11, %p1355_p1 }
  0x94   : > { %1365 = shalt.err (!%p1362_p12)
}
  0x95   : > { %s1455_s12 = smov 320   ;;  %s1826_s23 = smov 4  }
  0x96   : > { %s1827_s0 = smov 64   ;;  %p1828_p3 = scmp.ne.s32.totalorder %s1818_s7, 0 }
  0x97   : > { %1093 = dma.hbm_to_vmem [thread:$0]  (!%p1825_p8), %s1660_s6, 2048, %s1662_s11, %s1664_s13, %s1455_s12, %s1827_s0, %s1826_s23  }
  0x98   : > { %247 = sbr.rel (%p1828_p3) target bundleno = 893 (0x37d), region = 40  ;;  %p1829_p6 = scmp.eq.s32.totalorder (!%p1828_p3), %s1512_s22, 0 }
  0x9f   : > { %1411 = dma.done.wait (%p1829_p6), [#allocation4], 128   ;;  %p1830_p13 = pmov %p1829_p6 }
  0xa0   : > { %p1831_p7 = pmov %p1829_p6 }
  0xa1   : > { %1413 = vsyncadd (%p1830_p13), [#allocation4], 4294967168 }
  0xa2   : > { %1415 = dma.done.wait (%p1831_p7), [#allocation7], 4608   ;;  %p1832_p9 = pmov %p1829_p6 }
  0xa3   : > { %p1833_p10 = pmov %p1829_p6 }
  0xa4   : > { %1417 = vsyncadd (%p1832_p9), [#allocation7], 4294962688 }
  0xa5   : > { %1419 = dma.done.wait (%p1833_p10), [#allocation10], 640   ;;  %p1834_p8 = pmov %p1829_p6 }
  0xa6   : > { %s265_s7 = sand.u32 1, %s1512_s22   ;;  %s1710_s16 = sand.u32 1, %s1436_s19  }
  0xa7   : > { %1421 = vsyncadd (%p1834_p8), [#allocation10], 4294966656  ;;  %s972_s24 = sshll.u32 %s1710_s16, 7  ;;  %s266_s6 = scalar_lea.sflag [#allocation4], %s265_s7 }
  0xa8   : > { %s1713_s10 = scalar_lea.vmem [#allocation11], %s972_s24  ;;  %p1835_p2 = scmp.ne.s32.totalorder %s1814_s29, 0 }
  0xaa   : > { %1423 = dma.done.wait (%p1835_p2), %s266_s6, 2048  }
  0xab   : > { %1425 = vsyncadd (%p1835_p2), %s266_s6, 4294965248  ;;  %s973_s11 = sshll.u32 %s1710_s16, 4  ;;  %p1836_p4 = scmp.ne.s32.totalorder %s1512_s22, 0 }
  0xac   : > { %s1720_s13 = scalar_lea.vmem [#allocation12], %s973_s11  ;;  %v1153_v0 = vld [vmem:[#allocation6 + $0x4] ss:$8 sps:$4 sm:$0xff] (!%p1836_p4)   ;;  %v1155_v1 = vld [vmem:[#allocation6] ss:$8 sps:$4 sm:$0xff] (!%p1836_p4)   ;;  %v1456_v2 = vmov (!%p1836_p4), 0   ;;  %v309_v38 = vlaneseq (!%p1836_p4) }
  0xad   : > { %300 = sbr.rel (%p1836_p4) target bundleno = 625 (0x271), region = 64  ;;  %380 = vmatprep.mubr.bf16.mxu0 (!%p1836_p4), %v1456_v2  ;;  %348 = vmatprep.subr.bf16.mxu0 (!%p1836_p4), %v1153_v0  ;;  %v1156_v3 = vld [vmem:[#allocation6 + $0x14] ss:$8 sps:$4 sm:$0xff] (!%p1836_p4)   ;;  %v1158_v4 = vld [vmem:[#allocation6 + $0x10] ss:$8 sps:$4 sm:$0xff] (!%p1836_p4)   ;;  %vm344_vm0 = vcmask (!%p1836_p4), 261120  }
  0xae   : > { %349 = vmatpush1.bf16.msra.mxu0 (!%p1836_p4), %v1155_v1  ;;  %v1160_v5 = vld [vmem:[#allocation8 + $0x4] ss:$8 sps:$4 sm:$0xff] (!%p1836_p4)   ;;  %v1162_v6 = vld [vmem:[#allocation8] ss:$8 sps:$4 sm:$0xff] (!%p1836_p4)   ;;  %v1163_v7 = vld [vmem:[#allocation8 + $0x14] ss:$8 sps:$4 sm:$0xff] (!%p1836_p4)  }
  0xaf   : > { %350 = vmatprep.subr.bf16.mxu0 (!%p1836_p4), %v1156_v3  ;;  %v1159_v8 = vld [vmem:[#allocation3] sm:$0xff] (!%p1836_p4)   ;;  %602 = vmatprep.subr.bf16.mxu1 (!%p1836_p4), %v1160_v5  ;;  %v1166_v10 = vld [vmem:[#allocation8 + $0x24] ss:$8 sps:$4 sm:$0xff] (!%p1836_p4)   ;;  %v1168_v11 = vld [vmem:[#allocation8 + $0x20] ss:$8 sps:$4 sm:$0xff] (!%p1836_p4)   ;;  %v310_v39 = vshrl.u32 (!%p1836_p4), %v309_v38, 7 }
  0xb0   : > { %603 = vmatpush1.bf16.msra.mxu1 (!%p1836_p4), %v1162_v6  ;;  %v1165_v9 = vld [vmem:[#allocation8 + $0x10] ss:$8 sps:$4 sm:$0xff] (!%p1836_p4)   ;;  %v1169_v12 = vld [vmem:[#allocation8 + $0x34] ss:$8 sps:$4 sm:$0xff] (!%p1836_p4)   ;;  %v1172_v14 = vld [vmem:[#allocation8 + $0x44] ss:$8 sps:$4 sm:$0xff] (!%p1836_p4)  }
  0xb1   : > { %604 = vmatprep.subr.bf16.mxu1 (!%p1836_p4), %v1163_v7  ;;  %v1171_v13 = vld [vmem:[#allocation8 + $0x30] ss:$8 sps:$4 sm:$0xff] (!%p1836_p4)   ;;  %v1174_v15 = vld [vmem:[#allocation8 + $0x40] ss:$8 sps:$4 sm:$0xff] (!%p1836_p4)   ;;  %v1175_v16 = vld [vmem:[#allocation8 + $0x54] ss:$8 sps:$4 sm:$0xff] (!%p1836_p4)  }
  0xb2   : > { %351 = vmatpush1.bf16.msra.mxu0 (!%p1836_p4), %v1158_v4  ;;  %v1177_v17 = vld [vmem:[#allocation8 + $0x50] ss:$8 sps:$4 sm:$0xff] (!%p1836_p4)   ;;  %v1178_v18 = vld [vmem:[#allocation8 + $0x64] ss:$8 sps:$4 sm:$0xff] (!%p1836_p4)   ;;  %v1180_v19 = vld [vmem:[#allocation8 + $0x60] ss:$8 sps:$4 sm:$0xff] (!%p1836_p4)  }
  0xb3   : > { %v1181_v20 = vld [vmem:[#allocation8 + $0x74] ss:$8 sps:$4 sm:$0xff] (!%p1836_p4)   ;;  %v1183_v21 = vld [vmem:[#allocation8 + $0x70] ss:$8 sps:$4 sm:$0xff] (!%p1836_p4)   ;;  %v1184_v22 = vld [vmem:[#allocation8 + $0x84] ss:$8 sps:$4 sm:$0xff] (!%p1836_p4)  }
  0xb4   : > { %605 = vmatpush1.bf16.msra.mxu1 %v1165_v9  ;;  %v1186_v23 = vld [vmem:[#allocation8 + $0x80] ss:$8 sps:$4 sm:$0xff]   ;;  %v1187_v24 = vld [vmem:[#allocation8 + $0x94] ss:$8 sps:$4 sm:$0xff]   ;;  %v1189_v25 = vld [vmem:[#allocation8 + $0x90] ss:$8 sps:$4 sm:$0xff]  }
  0xb5   : > { %980 = vmatmul.mubr.msk.bf16.vlgmr.msra.gmra.mrb[0].mxu0 %vm344_vm0, %v1159_v8  ;;  %606 = vmatprep.subr.bf16.mxu1 %v1166_v10  ;;  %v1190_v26 = vld [vmem:[#allocation8 + $0xa4] ss:$8 sps:$4 sm:$0xff]   ;;  %v1192_v27 = vld [vmem:[#allocation8 + $0xa0] ss:$8 sps:$4 sm:$0xff]   ;;  %v1193_v28 = vld [vmem:[#allocation8 + $0xb4] ss:$8 sps:$4 sm:$0xff]  }
  0xb6   : > { %v1195_v29 = vld [vmem:[#allocation8 + $0xb0] ss:$8 sps:$4 sm:$0xff]   ;;  %v1196_v30 = vld [vmem:[#allocation8 + $0xc4] ss:$8 sps:$4 sm:$0xff]   ;;  %v1198_v31 = vld [vmem:[#allocation8 + $0xc0] ss:$8 sps:$4 sm:$0xff]  }
  0xb7   : > { %v1199_v32 = vld [vmem:[#allocation8 + $0xd4] ss:$8 sps:$4 sm:$0xff]   ;;  %v1201_v33 = vld [vmem:[#allocation8 + $0xd0] ss:$8 sps:$4 sm:$0xff]   ;;  %v1202_v34 = vld [vmem:[#allocation8 + $0xe4] ss:$8 sps:$4 sm:$0xff]  }
  0xb8   : > { %607 = vmatpush1.bf16.msra.mxu1 %v1168_v11  ;;  %v1204_v35 = vld [vmem:[#allocation8 + $0xe0] ss:$8 sps:$4 sm:$0xff]   ;;  %v1205_v36 = vld [vmem:[#allocation8 + $0xf4] ss:$8 sps:$4 sm:$0xff]   ;;  %v1207_v37 = vld [vmem:[#allocation8 + $0xf0] ss:$8 sps:$4 sm:$0xff]  }
  0xb9   : > { %608 = vmatprep.subr.bf16.mxu1 %v1169_v12  ;;  %v311_v40 = vsub.s32 0, %v310_v39  ;;  %v307_v41 = vld [vmem:[#allocation9] ss:$8 sm:$0x3]  ;;  %v315_v42 = vsub.s32 1, %v310_v39 }
  0xba   : > { %v430_v59 = vld [vmem:[#allocation9 + $0x1] ss:$8 sm:$0x3] }
  0xbb   : > { %v312_v43 = vrot.slane %v307_v41, %v311_v40  ;;  %v316_v44 = vrot.slane %v307_v41, %v315_v42  ;;  %v435_v60 = vrot.slane %v430_v59, %v311_v40  ;;  %v439_v61 = vrot.slane %v430_v59, %v315_v42 }
  0xbc   : > { %609 = vmatpush1.bf16.msra.mxu1 %v1171_v13 }
  0xbd   : > { %610 = vmatprep.subr.bf16.mxu1 %v1172_v14 }
  0xc0   : > { %611 = vmatpush1.bf16.msra.mxu1 %v1174_v15 }
  0xc1   : > { %612 = vmatprep.subr.bf16.mxu1 %v1175_v16 }
  0xc4   : > { %613 = vmatpush1.bf16.msra.mxu1 %v1177_v17 }
  0xc5   : > { %614 = vmatprep.subr.bf16.mxu1 %v1178_v18 }
  0xc8   : > { %615 = vmatpush1.bf16.msra.mxu1 %v1180_v19 }
  0xc9   : > { %616 = vmatprep.subr.bf16.mxu1 %v1181_v20 }
  0xcc   : > { %617 = vmatpush1.bf16.msra.mxu1 %v1183_v21 }
  0xcd   : > { %618 = vmatprep.subr.bf16.mxu1 %v1184_v22 }
  0xd0   : > { %619 = vmatpush1.bf16.msra.mxu1 %v1186_v23 }
  0xd1   : > { %620 = vmatprep.subr.bf16.mxu1 %v1187_v24 }
  0xd4   : > { %621 = vmatpush1.bf16.msra.mxu1 %v1189_v25 }
  0xd5   : > { %622 = vmatprep.subr.bf16.mxu1 %v1190_v26 }
  0xd8   : > { %623 = vmatpush1.bf16.msra.mxu1 %v1192_v27 }
  0xd9   : > { %624 = vmatprep.subr.bf16.mxu1 %v1193_v28 }
  0xdc   : > { %625 = vmatpush1.bf16.msra.mxu1 %v1195_v29 }
  0xdd   : > { %626 = vmatprep.subr.bf16.mxu1 %v1196_v30 }
  0xe0   : > { %627 = vmatpush1.bf16.msra.mxu1 %v1198_v31 }
  0xe1   : > { %628 = vmatprep.subr.bf16.mxu1 %v1199_v32 }
  0xe4   : > { %629 = vmatpush1.bf16.msra.mxu1 %v1201_v33 }
  0xe5   : > { %630 = vmatprep.subr.bf16.mxu1 %v1202_v34 }
  0xe8   : > { %631 = vmatpush1.bf16.msra.mxu1 %v1204_v35 }
  0xe9   : > { %632 = vmatprep.subr.bf16.mxu1 %v1205_v36 }
  0xec   : > { %633 = vmatpush1.bf16.msra.mxu1 %v1207_v37 }
 0x188   : > { %v382_v45 = vpop.f32.mrb[0].mxu0 }
 0x189   : > { %v383_v46 = vadd.f32 %v382_v45, %v312_v43  ;;  %v384_v47 = vpop.f32.mrb[1].mxu0 }
 0x18a   : > { %v385_v48 = vadd.f32 %v384_v47, %v316_v44  ;;  %v386_v49 = vpop.f32.mrb[2].mxu0 }
 0x18b   : > { %v387_v50 = vadd.f32 %v386_v49, %v312_v43  ;;  %v388_v51 = vpop.f32.mrb[3].mxu0  ;;  %v391_v53 = vmax.f32 %v383_v46, 0.0 }
 0x18c   : > { %v389_v52 = vadd.f32 %v388_v51, %v316_v44  ;;  %v392_v55 = vmax.f32 %v385_v48, 0.0 }
 0x18d   : > { %v393_v54 = vmax.f32 %v387_v50, 0.0 }
 0x18e   : > { %v394_v56 = vmax.f32 %v389_v52, 0.0 }
 0x18f   : > { %v395_v57 = vpack.c.bf16 %v393_v54, %v391_v53 }
 0x190   : > { %v396_v58 = vpack.c.bf16 %v394_v56, %v392_v55 }
 0x192   : > { %634 = vmatprep.mubr.bf16.mxu1 %v396_v58 }
 0x193   : > { %635 = vmatmul.mubr.bf16.vlgmr.msra.gmra.mrb[0].mxu1 %v395_v57 }
 0x266   : > { %v636_v62 = vpop.f32.mrb[0].mxu1 }
 0x267   : > { %v637_v63 = vadd.f32 %v636_v62, %v435_v60  ;;  %v638_v0 = vpop.f32.mrb[1].mxu1 }
 0x268   : > { %v639_v1 = vadd.f32 %v638_v0, %v439_v61  ;;  %v640_v2 = vpop.f32.mrb[2].mxu1 }
 0x269   : > { %v641_v3 = vadd.f32 %v640_v2, %v435_v60  ;;  %v642_v4 = vpop.f32.mrb[3].mxu1  ;;  %v645_v6 = vmax.f32 %v637_v63, 0.0 }
 0x26a   : > { %v643_v5 = vadd.f32 %v642_v4, %v439_v61  ;;  %v646_v8 = vmax.f32 %v639_v1, 0.0 }
 0x26b   : > { %v647_v7 = vmax.f32 %v641_v3, 0.0 }
 0x26c   : > { %v648_v9 = vmax.f32 %v643_v5, 0.0 }
 0x26d   : > { %v649_v10 = vpack.c.bf16 %v647_v7, %v645_v6 }
 0x26e   : > { %v650_v11 = vpack.c.bf16 %v648_v9, %v646_v8 }
 0x26f   : > { %651 = vst [vmem:[#allocation2] sm:$0xff] %v649_v10 }
 0x270   : > { %652 = vst [vmem:[#allocation2 + $0x8] sm:$0xff] %v650_v11 }
 0x271 PF: > { %v1208_v12 = vld [vmem:[%s1713_s10 + $0x40] sm:$0xff]   ;;  %v1210_v14 = vld [vmem:[%s1713_s10 + $0x48] sm:$0xff]   ;;  %v1212_v16 = vld [vmem:[%s1713_s10 + $0x50] sm:$0xff]   ;;  %s1013_s29 = sshll.u32 %s1512_s22, 7  ;;  %s845_s26 = sshll.u32 %s1720_s13, 4  ;;  %s1747_s26 = int_to_ptr.vmem [resolvable:$true] %s845_s26 }
 0x272   : > { %v1209_v13 = vld [vmem:[%s1713_s10] sm:$0xff]   ;;  %1035 = vmatprep.subr.bf16.mxu0 %v1208_v12  ;;  %v1211_v15 = vld [vmem:[%s1713_s10 + $0x8] sm:$0xff]   ;;  %v1213_v17 = vld [vmem:[%s1713_s10 + $0x10] sm:$0xff]   ;;  %s688_s17 = sshra.s32 %s1013_s29, 7  ;;  %s1745_s18 = scalar_lea.hbm %s1797_s5, %s1013_s29 }
 0x273   : > { %1036 = vmatpush3.bf16.msra.mxu0 %v1209_v13  ;;  %v1214_v18 = vld [vmem:[%s1713_s10 + $0x58] sm:$0xff]   ;;  %v1216_v20 = vld [vmem:[%s1713_s10 + $0x60] sm:$0xff]   ;;  %v1218_v22 = vld [vmem:[%s1713_s10 + $0x68] sm:$0xff]   ;;  %s1014_s9 = sshll.u32 %s688_s17, 3  ;;  %s833_s22 = scalar_lea.sflag [#allocation5], %s1710_s16 }
 0x274   : > { %1037 = vmatprep.subr.bf16.mxu0 %v1210_v14  ;;  %v1215_v19 = vld [vmem:[%s1713_s10 + $0x18] sm:$0xff]   ;;  %v1217_v21 = vld [vmem:[%s1713_s10 + $0x20] sm:$0xff]   ;;  %v1219_v24 = vld [vmem:[%s1713_s10 + $0x28] sm:$0xff]   ;;  %s691_s25 = scalar_lea.vmem [#allocation9], %s1014_s9  ;;  %s1366_s15 = scalar_lea.vmem %s1747_s26, 256 }
 0x275   : > { %v1220_v25 = vld [vmem:[%s1713_s10 + $0x70] sm:$0xff]   ;;  %v1222_v27 = vld [vmem:[%s1713_s10 + $0x78] sm:$0xff]   ;;  %v692_v31 = vld [vmem:[%s691_s25 + $0x2] ss:$0 sm:$0xff]  ;;  %p1367_p1 = scmp.ne.s32.totalorder %s1747_s26, %s1366_s15  ;;  %p1837_p0 = scmp.ne.s32.totalorder %s1815_s30, 0 }
 0x276   : > { %v1221_v26 = vld [vmem:[%s1713_s10 + $0x30] sm:$0xff]   ;;  %v1223_v28 = vld [vmem:[%s1713_s10 + $0x38] sm:$0xff]   ;;  %v654_v29 = vld [vmem:[#allocation2] sm:$0xff]  ;;  %s1457_s8 = smov [#allocation12]  }
 0x277   : > { %1038 = vmatpush3.bf16.msra.mxu0 %v1211_v15  ;;  %v655_v23 = vld [vmem:[#allocation2 + $0x8] sm:$0xff]  ;;  %p1368_p5 = pnand %p1367_p1, %p1837_p0  ;;  %s1370_s28 = sshll.u32 %s1457_s8, 4  ;;  %s1371_s28 = int_to_ptr.vmem [resolvable:$false] %s1370_s28 }
 0x278   : > { %1039 = vmatprep.subr.bf16.mxu0 %v1212_v16  ;;  %821 = vmatprep.mubr.bf16.mxu0 %v655_v23  ;;  %s1372_s12 = scalar_lea.vmem %s1371_s28, 512  ;;  %p1373_p12 = scmp.lt.s32.totalorder %s1747_s26, %s1371_s28 }
 0x279   : > { %p1369_p11 = pneg %p1368_p5  ;;  %p1374_p3 = scmp.lt.s32.totalorder %s1372_s12, %s1366_s15 }
 0x27b   : > { %1040 = vmatpush3.bf16.msra.mxu0 %v1213_v17  ;;  %p1375_p6 = por %p1374_p3, %p1373_p12 }
 0x27c   : > { %1041 = vmatprep.subr.bf16.mxu0 %v1214_v18 }
 0x27d   : > { %p1376_p13 = pnand %p1375_p6, %p1369_p11 }
 0x27f   : > { %1042 = vmatpush3.bf16.msra.mxu0 %v1215_v19 }
 0x280   : > { %1043 = vmatprep.subr.bf16.mxu0 %v1216_v20 }
 0x283   : > { %1044 = vmatpush3.bf16.msra.mxu0 %v1217_v21 }
 0x284   : > { %1045 = vmatprep.subr.bf16.mxu0 %v1218_v22 }
 0x287   : > { %1046 = vmatpush3.bf16.msra.mxu0 %v1219_v24 }
 0x288   : > { %1047 = vmatprep.subr.bf16.mxu0 %v1220_v25 }
 0x28b   : > { %1048 = vmatpush3.bf16.msra.mxu0 %v1221_v26 }
 0x28c   : > { %1049 = vmatprep.subr.bf16.mxu0 %v1222_v27 }
 0x28f   : > { %1050 = vmatpush3.bf16.msra.mxu0 %v1223_v28 }
 0x292   : > { %822 = vmatmul.mubr.bf16.vlgmr.msra.gmra.mrb[0].mxu0 %v654_v29 }
 0x365   : > { %v1051_v30 = vpop.f32.mrb[0].mxu0 }
 0x366   : > { %v1052_v32 = vpop.f32.mrb[1].mxu0 }
 0x367   : > { %v1053_v33 = vadd.f32 %v1052_v32, %v1051_v30  ;;  %v1054_v34 = vpop.f32.mrb[2].mxu0 }
 0x368   : > { %v1055_v35 = vpop.f32.mrb[3].mxu0 }
 0x369   : > { %v824_v36 = vadd.f32 %v1053_v33, %v692_v31  ;;  %v1056_v37 = vadd.f32 %v1055_v35, %v1054_v34 }
 0x36b   : > { %830 = vst [vmem:[%s1720_s13] sm:$0xff] %v824_v36  ;;  %v827_v38 = vadd.f32 %v1056_v37, %v692_v31 }
 0x36d   : > { %831 = vst [vmem:[%s1720_s13 + $0x8] sm:$0xff] %v827_v38 }
 0x36e   : > { %1379 = shalt.err (!%p1376_p13)
}
 0x36f   : > { %s1380_s23 = scalar_lea.hbm %s1745_s18, 256  ;;  %s1384_s24 = scalar_lea.hbm %s1797_s5, 1280 }
 0x370   : > { %p1381_p7 = scmp.ne.s32.totalorder %s1745_s18, %s1380_s23  ;;  %p1385_p8 = scmp.lt.u32.totalorder %s1745_s18, %s1797_s5 }
 0x371   : > { %p1386_p2 = scmp.lt.u32.totalorder %s1384_s24, %s1380_s23  ;;  %p1388_p1 = scmp.lt.u32.totalorder %s1380_s23, %s1745_s18 }
 0x372   : > { %p1382_p9 = pnand %p1381_p7, %p1837_p0 }
 0x373   : > { %p1387_p4 = por %p1386_p2, %p1385_p8 }
 0x374   : > { %p1383_p10 = pneg %p1382_p9 }
 0x375   : > { %p1389_p5 = por %p1388_p1, %p1387_p4 }
 0x377   : > { %p1390_p11 = pnand %p1389_p5, %p1383_p10 }
 0x379   : > { %1393 = shalt.err (!%p1390_p11)
}
 0x37a   : > { %s1458_s11 = smov 128   ;;  %s1459_s13 = smov 640  }
 0x37b   : > { %s1460_s29 = smov 8  }
 0x37c   : > { %1075 = dma.vmem_to_hbm [thread:$0]  (%p1837_p0), %s1747_s26, 256, %s1745_s18, %s833_s22, %s1458_s11, %s1459_s13, %s1460_s29  }
 0x37d PF: > { %s1838_s17 = sld [smem:[#allocation18_spill]]  ;;  %s1839_s9 = sld [smem:[#allocation21_spill]] }
 0x37e   : > { %p1107_p12 = scmp.ge.s32.totalorder %s1444_s21, 2 }
 0x383   : > { %s860_s25 = sand.u32 1, %s1838_s17   ;;  %p1840_p3 = scmp.ne.s32.totalorder %s1839_s9, 0 }
 0x384   : > { %s861_s14 = scalar_lea.sflag [#allocation5], %s860_s25 }
 0x385   : > { %p1095_p6 = pnand %p1107_p12, %p1840_p3 }
 0x387   : > { %1427 = dma.done.wait (!%p1095_p6), %s861_s14, 256  }
 0x388   : > { %1429 = vsyncadd (!%p1095_p6), %s861_s14, 4294967040  ;;  %s1841_s21 = sld [smem:[#allocation19_spill]]  ;;  %s1842_s27 = sld [smem:[#allocation20_spill]] }
 0x389   : > { %s1843_s18 = smov %s1436_s19  ;;  %s1844_s19 = smov %s1440_s20 }
 0x38e   : > { %p18_p13 = scmp.ge.s32.totalorder %s1841_s21, 7   ;;  %s1845_s20 = smov %s1842_s27 }
 0x390   :  { %20 = sbr.rel (!%p18_p13) target bundleno = 8 (0x8), region = 106 }
 0x397   :  { %866 = vsyncpa [#allocation4], 1 }
 0x398   :  { %868 = vsyncpa [#allocation4 + $0x1], 1 }
 0x399   :  { %869 = vsyncpa [#allocation7], 1 }
 0x39a   :  { %870 = vsyncpa [#allocation10], 1 }
 0x39b   :  { %871 = vsyncpa [#allocation5], 1 }
 0x39c   :  { %873 = vsyncpa [#allocation5 + $0x1], 1 }

</bundles_post_ra>
